<compile_context>
chip_gen: v7x
topology: tpu7x:2x2x1
jax: 0.10.0
libtpu: 0.0.40
codegen_flags: <defaults>
</compile_context>

<pallas_src>
import jax
import jax.numpy as jnp
from jax import lax
from jax.experimental import pallas as pl
from jax.experimental.pallas import tpu as pltpu

# ---------------------------------------------------------------------------
# Model configuration (mirrors AgentNetworkBase.__init__ defaults)
# ---------------------------------------------------------------------------
INPUT_SIZE = 32          # _get_input_size()
HIDDEN_LAYERS = [8, 8]   # config.network.hidden_layers default
OUTPUT_SIZE = 1          # _get_output_size()
ACTIVATION = "ReLU"      # config.network.activation_function default

# Activation name -> jnp function, resolved statically at trace time
# (mirrors getattr(nn, activation_function_name)()).
_ACTIVATIONS = {
    "ReLU": lambda v: jnp.maximum(v, 0.0),
    "Tanh": jnp.tanh,
    "Sigmoid": jax.nn.sigmoid,
    # torch.nn.GELU default is exact erf; jax.nn.gelu defaults to tanh approx.
    "GELU": lambda v: jax.nn.gelu(v, approximate=False),
    "ELU": jax.nn.elu,
    "LeakyReLU": lambda v: jnp.where(v > 0, v, 0.01 * v),
    "Identity": lambda v: v,
}
_TRANSCENDENTAL_ACTS = frozenset({"Tanh", "Sigmoid", "GELU", "ELU"})


def _round_up(n: int, m: int) -> int:
    return ((n + m - 1) // m) * m


def _make_mlp_kernel(meta, activation: str):
    """Build the fused-MLP kernel body.

    meta:
      'b1'    : (rows, col)  — layer-1 bias column inside the slab.
      'layers': tuple over layers 2..L of
                ((w_rows, w_col, w_cols), (b_rows, b_col)) slab coordinates.
    All slab slices use static indices (zero runtime cost).
    """
    act = _ACTIVATIONS[activation]
    b1_rows, b1_col = meta["b1"]
    hidden_meta = meta["layers"]

    def kernel(x_ref, w1_ref, slab_ref, o_ref):
        # Layer 1: hT = W1 @ x.T + b1, computed without materializing x.T by
        # contracting x's feature (last) axis — one MXU pass, bf16-native when
        # x (and therefore w1) are bf16, accumulating in f32.
        x = x_ref[...]                                    # (block_batch, d_in)
        h = lax.dot_general(
            w1_ref[...], x,
            dimension_numbers=(((1,), (1,)), ((), ())),
            preferred_element_type=jnp.float32,
        )                                                  # (h0, block_batch) f32
        h = h + slab_ref[0:b1_rows, b1_col:b1_col + 1]

        # Remaining layers stay in (features, batch) layout: hT = W @ hT + b.
        # Activation after every layer except the last (matches nn.Sequential).
        for (w_rows, w_col, w_cols), (b_rows, b_col) in hidden_meta:
            h = act(h)
            w = slab_ref[0:w_rows, w_col:w_col + w_cols]   # (out_i, in_i) f32
            h = jnp.dot(w, h, preferred_element_type=jnp.float32)
            h = h + slab_ref[0:b_rows, b_col:b_col + 1]

        # Final result is already lane-dense: (d_out, block_batch).
        o_ref[...] = h.astype(o_ref.dtype)

    return kernel


def agent_network_forward(x, params, *, block_batch=None, activation=ACTIVATION,
                          return_feature_major=False):
    """Run the fused MLP kernel.

    Args:
      x: (batch, input_size) array; f32 or bf16 (bf16 halves HBM traffic and
         is NOT upcast in the wrapper — accumulation is still f32).
      params: dict with w{i}: (out_i, in_i) [PyTorch nn.Linear layout] and
              b{i}: (out_i,) or (out_i, 1), for i = 1..num_layers.
      block_batch: rows per grid step.  Default: whole batch (<=1024) in one
        step, otherwise up to 8192-row, 128-multiple tiles sized so the grid
        has >= 2 "parallel" steps (both v7x TensorCores stay busy).  This is
        the primary tuning knob; sweep 2048-16384 on real workloads.
      activation: hidden activation name (resolved at trace time).
      return_feature_major: if True, return (d_out, batch) lane-dense output
        (avoids the wrapper-side transpose for multi-output heads).

    Returns:
      (batch, output_size) float32 (or (output_size, batch) if
      return_feature_major).
    """
    x = jnp.asarray(x)
    if x.dtype not in (jnp.bfloat16, jnp.float32):
        x = x.astype(jnp.float32)
    batch, d_in = x.shape

    num_layers = len(params) // 2
    dims = [d_in] + [params[f"w{li}"].shape[0] for li in range(1, num_layers + 1)]
    d_out = dims[-1]

    # --- parameter slab ------------------------------------------------------
    # w1 travels separately in x.dtype (native bf16 MXU pass when x is bf16).
    # Everything else (layer>=2 weights + all biases) is packed into a single
    # zero-padded f32 slab with a constant index_map: one resident VMEM block.
    w1 = jnp.asarray(params["w1"], x.dtype)                       # (h0, d_in)
    slab_rows = _round_up(max(dims[1:]), 8)

    pieces, col = [], 0

    def _add(arr_f32, rows):
        nonlocal col
        pieces.append(jnp.pad(arr_f32, ((0, slab_rows - rows), (0, 0))))
        start = col
        col += arr_f32.shape[1]
        return start

    b1 = jnp.asarray(params["b1"], jnp.float32).reshape(dims[1], 1)
    b1_meta = (dims[1], _add(b1, dims[1]))
    hidden_meta = []
    for li in range(2, num_layers + 1):
        w = jnp.asarray(params[f"w{li}"], jnp.float32)            # (out, in)
        b = jnp.asarray(params[f"b{li}"], jnp.float32).reshape(dims[li], 1)
        out_i, in_i = w.shape
        w_meta = (out_i, _add(w, out_i), in_i)
        b_meta = (out_i, _add(b, out_i))
        hidden_meta.append((w_meta, b_meta))
    slab = jnp.concatenate(pieces, axis=1)
    slab = jnp.pad(slab, ((0, 0), (0, _round_up(col, 128) - col)))
    meta = {"b1": b1_meta, "layers": tuple(hidden_meta)}

    # --- tile-size selection --------------------------------------------------
    sub = 16 if x.dtype == jnp.bfloat16 else 8      # sublane packing per dtype
    if block_batch is None:
        if batch <= 1024:
            block_batch = _round_up(batch, sub)     # single grid step
        else:
            # Large tiles amortize the ~0.35us per-step pipeline overhead, but
            # keep >= 2 blocks so both v7x TensorCores get work.
            block_batch = min(8192, _round_up(pl.cdiv(batch, 2), 128))
    block_batch = _round_up(int(block_batch), sub)
    if batch > block_batch:
        # Multiple grid steps: lane-dense output block must be a 128-multiple.
        block_batch = _round_up(block_batch, 128)
    num_blocks = pl.cdiv(batch, block_batch)
    padded_batch = num_blocks * block_batch

    if padded_batch != batch:
        # Pad rows are zeros; each output row depends only on its own input
        # row, so pad rows are simply sliced off at the end.
        x = jnp.pad(x, ((0, padded_batch - batch), (0, 0)))

    # --- VMEM budget (x block lane-pads d_in -> 128; everything double-buffered)
    itemsize = jnp.dtype(x.dtype).itemsize
    x_blk_bytes = block_batch * _round_up(d_in, 128) * itemsize
    o_blk_bytes = block_batch * _round_up(d_out, 8) * 4
    param_bytes = slab.size * 4 + w1.shape[0] * _round_up(d_in, 128) * itemsize
    vmem_need = 2 * (x_blk_bytes + o_blk_bytes + param_bytes)
    vmem_limit = None
    if vmem_need > (14 << 20):                       # above v5e's 16 MiB default
        vmem_limit = min(vmem_need + (4 << 20), 64 << 20)

    # --- cost estimate (cheap, bandwidth-shaped op) ---------------------------
    flops = 2 * padded_batch * sum(dims[i] * dims[i + 1] for i in range(num_layers))
    transcendentals = (padded_batch * sum(dims[1:-1])
                       if activation in _TRANSCENDENTAL_ACTS else 0)
    bytes_accessed = (padded_batch * d_in * itemsize        # read x (dominant)
                      + padded_batch * d_out * 4            # write output
                      + w1.size * itemsize + slab.size * 4) # params (negligible)
    cost = pl.CostEstimate(flops=flops, transcendentals=transcendentals,
                           bytes_accessed=bytes_accessed)

    # --- specs / call ----------------------------------------------------------
    in_specs = [
        pl.BlockSpec((block_batch, d_in), lambda i: (i, 0)),
        pl.BlockSpec(w1.shape, lambda i: (0, 0)),      # resident: DMA'd once
        pl.BlockSpec(slab.shape, lambda i: (0, 0)),    # resident: DMA'd once
    ]

    out_t = pl.pallas_call(
        _make_mlp_kernel(meta, activation),
        out_shape=jax.ShapeDtypeStruct((d_out, padded_batch), jnp.float32),
        grid_spec=pltpu.PrefetchScalarGridSpec(
            num_scalar_prefetch=0,
            grid=(num_blocks,),
            in_specs=in_specs,
            out_specs=pl.BlockSpec((d_out, block_batch), lambda i: (0, i)),
        ),
        compiler_params=pltpu.CompilerParams(
            dimension_semantics=("parallel",),
            vmem_limit_bytes=vmem_limit,
        ),
        cost_estimate=cost,
    )(x, w1, slab)

    if return_feature_major:
        return out_t[:, :batch]
    # For d_out == 1 this .T is just a reshape (free).  For multi-output heads
    # prefer return_feature_major=True and keep the consumer lane-dense.
    return out_t.T[:batch]


def init_params(key, input_size, hidden_layers, output_size):
    """PyTorch nn.Linear-style init: U(-1/sqrt(fan_in), 1/sqrt(fan_in)).

    Weights stored in PyTorch layout (out_features, in_features); biases as
    (out_features, 1) columns.
    """
    dims = [input_size] + list(hidden_layers) + [output_size]
    params = {}
    for li in range(len(dims) - 1):
        fan_in, fan_out = dims[li], dims[li + 1]
        key, kw, kb = jax.random.split(key, 3)
        bound = 1.0 / jnp.sqrt(jnp.float32(fan_in))
        params[f"w{li + 1}"] = jax.random.uniform(
            kw, (fan_out, fan_in), jnp.float32, -bound, bound)
        params[f"b{li + 1}"] = jax.random.uniform(
            kb, (fan_out, 1), jnp.float32, -bound, bound)
    return params


def reference_forward(x, params, activation=ACTIVATION):
    """Pure-JAX f32 reference of the same MLP (PyTorch: y = x @ W.T + b)."""
    act = _ACTIVATIONS[activation]
    num_layers = len(params) // 2
    h = jnp.asarray(x, jnp.float32)
    for li in range(1, num_layers + 1):
        w, b = params[f"w{li}"], params[f"b{li}"]
        h = h @ w.T + b[:, 0]
        if li < num_layers:
            h = act(h)
    return h


if __name__ == "__main__":
    key = jax.random.PRNGKey(0)
    key, kx = jax.random.split(key)
    params = init_params(key, INPUT_SIZE, HIDDEN_LAYERS, OUTPUT_SIZE)

    # 1) Small f32 batch: single grid step, tight tolerance.
    batch = 16
    x = jax.random.normal(kx, (batch, INPUT_SIZE), jnp.float32)
    out = jax.block_until_ready(agent_network_forward(x, params))
    ref = reference_forward(x, params)
    assert out.shape == (batch, OUTPUT_SIZE)
    assert jnp.allclose(out, ref, atol=1e-5, rtol=1e-5)

    # 2) Ragged f32 batch exercising the multi-block, lane-dense (128-multiple)
    #    path with wrapper-side zero padding.
    key, kx2 = jax.random.split(key)
    batch2 = 300
    x2 = jax.random.normal(kx2, (batch2, INPUT_SIZE), jnp.float32)
    out2 = jax.block_until_ready(
        agent_network_forward(x2, params, block_batch=128))
    ref2 = reference_forward(x2, params)
    assert out2.shape == (batch2, OUTPUT_SIZE)
    assert jnp.allclose(out2, ref2, atol=1e-5, rtol=1e-5)

    # 3) bf16 input path: halves HBM traffic; f32 accumulation; default tile
    #    selection gives a 2-step "parallel" grid (both v7x TensorCores).
    key, kx3 = jax.random.split(key)
    batch3 = 2048
    x3_f32 = jax.random.normal(kx3, (batch3, INPUT_SIZE), jnp.float32)
    out3 = jax.block_until_ready(
        agent_network_forward(x3_f32.astype(jnp.bfloat16), params))
    ref3 = reference_forward(x3_f32, params)
    assert out3.shape == (batch3, OUTPUT_SIZE)
    assert jnp.allclose(out3, ref3, atol=5e-2, rtol=5e-2)

    print("KERNEL_OK")
</pallas_src>

<mosaic_0001>
module attributes {stable_mosaic.version = 11 : i64} {
  func.func @kernel(%arg0: i32, %arg1: memref<16x32xf32, #tpu.memory_space<vmem>>, %arg2: memref<8x32xf32, #tpu.memory_space<vmem>>, %arg3: memref<8x128xf32, #tpu.memory_space<vmem>>, %arg4: memref<1x16xf32, #tpu.memory_space<vmem>>) attributes {dimension_semantics = [#tpu.dimension_semantics<parallel>], iteration_bounds = array<i64: 1>, scalar_prefetch = 0 : i64, scratch_operands = 0 : i64, tpu.core_type = #tpu.core_type<tc>, window_params = [{transform_indices = @transform_0, window_bounds = array<i64: 16, 32>}, {pipeline_mode = #tpu.pipeline_mode<synchronous>, transform_indices = @transform_1, window_bounds = array<i64: 8, 32>}, {pipeline_mode = #tpu.pipeline_mode<synchronous>, transform_indices = @transform_2, window_bounds = array<i64: 8, 128>}, {transform_indices = @transform_3, window_bounds = array<i64: 1, 16>}]} {
    %c0 = arith.constant 0 : index
    %c0_0 = arith.constant 0 : index
    %0 = vector.load %arg1[%c0, %c0_0] : memref<16x32xf32, #tpu.memory_space<vmem>>, vector<16x32xf32>
    %c0_1 = arith.constant 0 : index
    %c0_2 = arith.constant 0 : index
    %1 = vector.load %arg2[%c0_1, %c0_2] : memref<8x32xf32, #tpu.memory_space<vmem>>, vector<8x32xf32>
    %cst = arith.constant dense<0.000000e+00> : vector<8x16xf32>
    %2 = tpu.matmul %1, %0, %cst {dimension_numbers = #tpu.dot_dimension_numbers<[1], [1], [0], [0], [0, 0, 1, 0], [], []>} : vector<8x32xf32>, vector<16x32xf32>, vector<8x16xf32> -> vector<8x16xf32>
    %c0_3 = arith.constant 0 : index
    %c0_4 = arith.constant 0 : index
    %3 = vector.load %arg3[%c0_3, %c0_4] : memref<8x128xf32, #tpu.memory_space<vmem>>, vector<8x1xf32>
    %4 = vector.broadcast %3 : vector<8x1xf32> to vector<8x16xf32>
    %5 = arith.addf %2, %4 : vector<8x16xf32>
    %cst_5 = arith.constant 0.000000e+00 : f32
    %6 = vector.broadcast %cst_5 : f32 to vector<8x16xf32>
    %7 = arith.maximumf %5, %6 : vector<8x16xf32>
    %c0_6 = arith.constant 0 : index
    %c1 = arith.constant 1 : index
    %8 = vector.load %arg3[%c0_6, %c1] : memref<8x128xf32, #tpu.memory_space<vmem>>, vector<8x8xf32>
    %cst_7 = arith.constant dense<0.000000e+00> : vector<8x16xf32>
    %9 = tpu.matmul %8, %7, %cst_7 {dimension_numbers = #tpu.dot_dimension_numbers<[1], [0], [0], [1], [0, 0, 1, 1], [], []>} : vector<8x8xf32>, vector<8x16xf32>, vector<8x16xf32> -> vector<8x16xf32>
    %c0_8 = arith.constant 0 : index
    %c9 = arith.constant 9 : index
    %10 = vector.load %arg3[%c0_8, %c9] : memref<8x128xf32, #tpu.memory_space<vmem>>, vector<8x1xf32>
    %11 = vector.broadcast %10 : vector<8x1xf32> to vector<8x16xf32>
    %12 = arith.addf %9, %11 : vector<8x16xf32>
    %cst_9 = arith.constant 0.000000e+00 : f32
    %13 = vector.broadcast %cst_9 : f32 to vector<8x16xf32>
    %14 = arith.maximumf %12, %13 : vector<8x16xf32>
    %c0_10 = arith.constant 0 : index
    %c10 = arith.constant 10 : index
    %15 = vector.load %arg3[%c0_10, %c10] : memref<8x128xf32, #tpu.memory_space<vmem>>, vector<1x8xf32>
    %cst_11 = arith.constant dense<0.000000e+00> : vector<1x16xf32>
    %16 = tpu.matmul %15, %14, %cst_11 {dimension_numbers = #tpu.dot_dimension_numbers<[1], [0], [0], [1], [0, 0, 1, 1], [], []>} : vector<1x8xf32>, vector<8x16xf32>, vector<1x16xf32> -> vector<1x16xf32>
    %c0_12 = arith.constant 0 : index
    %c18 = arith.constant 18 : index
    %17 = vector.load %arg3[%c0_12, %c18] : memref<8x128xf32, #tpu.memory_space<vmem>>, vector<1x1xf32>
    %18 = vector.broadcast %17 : vector<1x1xf32> to vector<1x16xf32>
    %19 = arith.addf %16, %18 : vector<1x16xf32>
    %c0_13 = arith.constant 0 : index
    %c0_14 = arith.constant 0 : index
    %20 = vector.load %arg4[%c0_13, %c0_14] : memref<1x16xf32, #tpu.memory_space<vmem>>, vector<1x16xf32>
    tpu.vector_store %arg4[%c0_13, %c0_14], %19 {strides = array<i32>} : memref<1x16xf32, #tpu.memory_space<vmem>>, vector<1x16xf32>,
    return
  }
  func.func @transform_0(%arg0: i32) -> (i32, i32) {
    %c0_i32 = arith.constant 0 : i32
    %c0_i32_0 = arith.constant 0 : i32
    return %arg0, %c0_i32 : i32, i32
  }
  func.func @transform_1(%arg0: i32) -> (i32, i32) {
    %c0_i32 = arith.constant 0 : i32
    %c0_i32_0 = arith.constant 0 : i32
    %c0_i32_1 = arith.constant 0 : i32
    return %c0_i32, %c0_i32_0 : i32, i32
  }
  func.func @transform_2(%arg0: i32) -> (i32, i32) {
    %c0_i32 = arith.constant 0 : i32
    %c0_i32_0 = arith.constant 0 : i32
    %c0_i32_1 = arith.constant 0 : i32
    return %c0_i32, %c0_i32_0 : i32, i32
  }
  func.func @transform_3(%arg0: i32) -> (i32, i32) {
    %c0_i32 = arith.constant 0 : i32
    %c0_i32_0 = arith.constant 0 : i32
    return %c0_i32, %arg0 : i32, i32
  }
}

</mosaic_0001>

<bundles_post_ra>
// kernel: tpu_custom_call.1
= control target key start
LH: loop header
LB: loop body
LE: loop exit
PB: predicated region body
PF: predicated region fallthrough
CT: control target
= control target key end

     0   :  { %8 = vsyncpa [#allocation3], 0  ;;  %s556_s0 = inlined_call_operand.hbm [shape: f32[16,32], index: 0, kind: input, shape index: {}]   ;;  %s557_s1 = inlined_call_operand.hbm [shape: f32[8,32], index: 1, kind: input, shape index: {}]   ;;  %s558_s2 = inlined_call_operand.hbm [shape: f32[8,128], index: 2, kind: input, shape index: {}]   ;;  %s559_s3 = inlined_call_operand.hbm [shape: f32[1,16], index: 3, kind: output, shape index: {}]  }
   0x1   :  { %9 = vsyncpa [#allocation6], 0 }
   0x2   :  { %10 = vsyncpa [#allocation4], 0  ;;  %s464_s12 = smov [#allocation5]   ;;  %s465_s14 = smov [#allocation2]  }
   0x3   :  { %s29_s13 = sshll.u32 %s464_s12, 4  ;;  %s16_s15 = sshll.u32 %s465_s14, 4  ;;  %s30_s13 = int_to_ptr.vmem [resolvable:$true] %s29_s13  ;;  %s498_s15 = int_to_ptr.vmem [resolvable:$true] %s16_s15 }
   0x4   :  { %s370_s18 = scalar_lea.hbm %s557_s1, 128 }
   0x5   :  { %p371_p0 = scmp.ne.s32.totalorder %s557_s1, %s370_s18  ;;  %p374_p1 = scmp.lt.u32.totalorder %s370_s18, %s557_s1 }
   0x7   :  { %p376_p2 = pnand %p374_p1, %p371_p0 }
   0x9   :  { %379 = shalt.err (!%p376_p2)
}
   0xa   :  { %s380_s23 = scalar_lea.vmem %s30_s13, 128  ;;  %p385_p4 = scmp.lt.s32.totalorder %s30_s13, %s30_s13 }
   0xb   :  { %p381_p3 = scmp.ne.s32.totalorder %s30_s13, %s380_s23  ;;  %p386_p5 = scmp.lt.s32.totalorder %s380_s23, %s380_s23 }
   0xd   :  { %p387_p6 = por %p386_p5, %p385_p4 }
   0xf   :  { %p388_p7 = pnand %p387_p6, %p381_p3 }
  0x11   :  { %391 = shalt.err (!%p388_p7)
}
  0x12   :  { %32 = dma.hbm_to_vmem [thread:$0]  %s557_s1, 128, %s30_s13, [#allocation6]  }
  0x13   :  { %s392_s28 = scalar_lea.hbm %s556_s0, 256 }
  0x14   :  { %p393_p8 = scmp.ne.s32.totalorder %s556_s0, %s392_s28  ;;  %p396_p9 = scmp.lt.u32.totalorder %s392_s28, %s556_s0 }
  0x16   :  { %p398_p10 = pnand %p396_p9, %p393_p8 }
  0x18   :  { %401 = shalt.err (!%p398_p10)
}
  0x19   :  { %s402_s6 = scalar_lea.vmem %s498_s15, 256  ;;  %p407_p12 = scmp.lt.s32.totalorder %s498_s15, %s498_s15 }
  0x1a   :  { %p403_p11 = scmp.ne.s32.totalorder %s498_s15, %s402_s6  ;;  %p408_p13 = scmp.lt.s32.totalorder %s402_s6, %s402_s6 }
  0x1c   :  { %p409_p0 = por %p408_p13, %p407_p12 }
  0x1e   :  { %p410_p1 = pnand %p409_p0, %p403_p11 }
  0x20   :  { %413 = shalt.err (!%p410_p1)
}
  0x21   :  { %s466_s1 = smov 128   ;;  %s467_s7 = smov 8  }
  0x22   :  { %22 = dma.hbm_to_vmem [thread:$0]  %s556_s0, 256, %s498_s15, [#allocation3], %s466_s1, %s466_s1, %s467_s7  }
  0x23   :  { %s468_s10 = smov [#allocation7]   ;;  %s414_s14 = scalar_lea.hbm %s558_s2, 128 }
  0x24   :  { %s39_s11 = sshll.u32 %s468_s10, 4  ;;  %p415_p2 = scmp.ne.s32.totalorder %s558_s2, %s414_s14  ;;  %s40_s11 = int_to_ptr.vmem [resolvable:$true] %s39_s11 }
  0x25   :  { %p418_p3 = scmp.lt.u32.totalorder %s414_s14, %s558_s2 }
  0x27   :  { %p420_p4 = pnand %p418_p3, %p415_p2 }
  0x29   :  { %423 = shalt.err (!%p420_p4)
}
  0x2a   :  { %s424_s20 = scalar_lea.vmem %s40_s11, 128  ;;  %p429_p6 = scmp.lt.s32.totalorder %s40_s11, %s40_s11 }
  0x2b   :  { %p425_p5 = scmp.ne.s32.totalorder %s40_s11, %s424_s20  ;;  %p430_p7 = scmp.lt.s32.totalorder %s424_s20, %s424_s20 }
  0x2d   :  { %p431_p8 = por %p430_p7, %p429_p6 }
  0x2f   :  { %p432_p9 = pnand %p431_p8, %p425_p5 }
  0x31   :  { %435 = shalt.err (!%p432_p9)
}
  0x32   :  { %42 = dma.hbm_to_vmem [thread:$0]  %s558_s2, 128, %s40_s11, [#allocation6]  }
  0x33   :  { %458 = dma.done.wait [#allocation3], 256  }
  0x34   :  { %459 = vsyncadd [#allocation3], 4294967040 }
  0x35   :  { %460 = dma.done.wait [#allocation6], 256  }
  0x36   :  { %461 = vsyncadd [#allocation6], 4294967040  ;;  %v469_v0 = vmov 0.0|0.0   ;;  %vm470_vm0 = vmmov 0   ;;  %v471_v1 = vmov 0.0   ;;  %v472_v2 = vmov 0  }
  0x37   :  { %349 = vmatprep.subr.bf16.mxu0 %v469_v0  ;;  %336 = vmatprep.mubr.msk.f32.mxu0 %vm470_vm0, %v471_v1  ;;  %vm61_vm1 = vcmask 261120   ;;  %v52_v3 = vld [vmem:[#allocation2] sm:$0xff]  ;;  %v53_v4 = vld [vmem:[#allocation2 + $0x8] sm:$0xff]  ;;  %v55_v6 = vld [vmem:[#allocation7] sm:$0xff]  ;;  %s473_s2 = smov 127   ;;  %v474_v8 = vmov 9  }
  0x38   :  { %367 = vset.pattern.permute.xlu0 %v472_v2  ;;  %339 = vmatprep.subr.mxu1 %v471_v1  ;;  %vm351_vm2 = vmpackc.low %vm61_vm1, %vm61_vm1  ;;  %v350_v5 = vpack.c.bf16 %v53_v4, %v52_v3  ;;  %v54_v7 = vld [vmem:[#allocation5] sm:$0xff]  ;;  %v222_v9 = vld [vmem:[#allocation7] sm:$0x1]  ;;  %s475_s21 = smov 118   ;;  %vm148_vm3 = vcmask 64512   ;;  %v476_v16 = vmov 18  }
  0x39   :  { %341 = vmatprep.mubr.msk.f32.mxu1 %vm470_vm0, %v471_v1  ;;  %58 = vperm.xlu0 %367, %v55_v6   ;;  %s477_s22 = smov [#allocation8]   ;;  %vm302_vm4 = vcmask 122880  }
  0x3a   :  { %352 = vmatpush3.bf16.xpose.msk.msra.mxu0 %vm351_vm2, %v350_v5  ;;  %368 = vset.pattern.permute.xlu1 %v474_v8  ;;  %s310_s23 = sshll.u32 %s477_s22, 4  ;;  %s311_s23 = int_to_ptr.vmem [resolvable:$true] %s310_s23 }
  0x3b   :  { %143 = vperm.xlu1 %368, %v55_v6   ;;  %s436_s24 = scalar_lea.vmem %s311_s23, 16  ;;  %s440_s25 = scalar_lea.vmem %s311_s23, 32 }
  0x3c   :  { %p437_p10 = scmp.ne.s32.totalorder %s311_s23, %s436_s24  ;;  %p441_p11 = scmp.lt.s32.totalorder %s311_s23, %s311_s23 }
  0x3d   :  { %146 = vrot.lane.b32.xlu0 %v55_v6, %s473_s2  ;;  %p442_p12 = scmp.lt.s32.totalorder %s440_s25, %s436_s24 }
  0x3e   :  { %369 = vset.pattern.permute.xlu0 %v476_v16 }
  0x3f   :  { %228 = vrot.lane.b32.xlu1 %v222_v9, %s475_s21  ;;  %p443_p13 = por %p442_p12, %p441_p11 }
  0x41   :  { %337 = vmatmul.mubr.msk.f32.vlgmr.msra.gmra.mrb[0].mxu0 %vm61_vm1, %v54_v7  ;;  %225 = vperm.xlu0 %369, %v222_v9   ;;  %p444_p0 = pnand %p443_p13, %p437_p10 }
  0xb8   :  { %v59_v10 = vpop.permute.xlu0 %58 }
  0xba   :  { %v144_v17 = vpop.permute.xlu1 %143 }
  0xbc   :  { %v147_v15 = vpop.permute.xlu0 %146 }
  0xbe   :  { %v229_v22 = vpop.permute.xlu1 %228 }
  0xc0   :  { %v226_v23 = vpop.permute.xlu0 %225 }
 0x114   :  { %v137_v11 = vpop.f32.mrb[0].mxu0 }
 0x115   :  { %v138_v12 = vadd.f32 %v137_v11, %v59_v10  ;;  %v338_v13 = vpop.f32.mrb[1].mxu0 }
 0x117   :  { %v141_v14 = vmax.f32 %v138_v12, 0.0 }
 0x119   :  { %340 = vmatpush3.msra.mxu1 %v141_v14 }
 0x11a   :  { %342 = vmatmul.mubr.msk.f32.vlgmr.msra.gmra.mrb[0].mxu1 %vm148_vm3, %v147_v15  ;;  %344 = vmatprep.subr.mxu1 %v471_v1 }
 0x11b   :  { %346 = vmatprep.mubr.msk.f32.mxu1 %vm470_vm0, %v471_v1 }
 0x1ed   :  { %v217_v18 = vpop.f32.mrb[0].mxu1 }
 0x1ee   :  { %v218_v19 = vadd.f32 %v217_v18, %v144_v17  ;;  %v343_v20 = vpop.f32.mrb[1].mxu1 }
 0x1f0   :  { %v221_v21 = vmax.f32 %v218_v19, 0.0 }
 0x1f2   :  { %345 = vmatpush3.msra.mxu1 %v221_v21 }
 0x1f3   :  { %347 = vmatmul.mubr.msk.f32.vlgmr.msra.gmra.mrb[2].mxu1 %vm148_vm3, %v229_v22 }
 0x2c6   :  { %v298_v24 = vpop.f32.mrb[2].mxu1 }
 0x2c7   :  { %v299_v25 = vadd.f32 %v298_v24, %v226_v23  ;;  %v348_v26 = vpop.f32.mrb[3].mxu1 }
 0x2c9   :  { %303 = vst.msk [vmem:[#allocation8] sm:$0x1] %vm302_vm4, %v299_v25 }
 0x2ca   :  { %447 = shalt.err (!%p444_p0)
}
 0x2cb   :  { %s448_s28 = scalar_lea.hbm %s559_s3, 16 }
 0x2cc   :  { %p449_p1 = scmp.ne.s32.totalorder %s559_s3, %s448_s28  ;;  %p452_p2 = scmp.lt.u32.totalorder %s448_s28, %s559_s3 }
 0x2ce   :  { %p454_p3 = pnand %p452_p2, %p449_p1 }
 0x2d0   :  { %457 = shalt.err (!%p454_p3)
}
 0x2d1   :  { %313 = dma.vmem_to_hbm [thread:$0]  %s311_s23, 16, %s559_s3, [#allocation4]  }
 0x2d2   :  { %462 = dma.done.wait [#allocation4], 16  }
 0x2d3   :  { %463 = vsyncadd [#allocation4], 4294967280 }
 0x2d4   :  { %317 = vsyncpa [#allocation3], 1 }
 0x2d5   :  { %318 = vsyncpa [#allocation6], 1 }
 0x2d6   :  { %319 = vsyncpa [#allocation4], 1 }

</bundles_post_ra>
